<compile_context>
chip_gen: v7x
topology: tpu7x:2x2x1
jax: 0.10.0
libtpu: 0.0.40
codegen_flags: <defaults>
</compile_context>

<pallas_src>
import jax
import jax.numpy as jnp
from jax.experimental import pallas as pl
from jax.experimental.pallas import tpu as pltpu


def _round_up(n, m):
    return ((n + m - 1) // m) * m


def _mlp_kernel(x_ref, w1_ref, b1_ref, w2_ref, b2_ref, w3_ref, b3_ref, w4_ref,
                o_ref):
    """One batch tile, transposed layout: x_ref is (input_size, TILE_N)."""
    in_features = x_ref.shape[0]

    # ---- layer1 + tanh -----------------------------------------------------
    # K = input_size is tiny (2 for a 2-D PINN); a full MXU push is wasted on
    # it, so use VPU broadcast multiply-adds instead (co-issues with EUP tanh).
    if in_features <= 8:
        w1 = w1_ref[...].astype(jnp.float32)                      # (H, in)
        acc = w1[:, 0:1] * x_ref[0:1, :].astype(jnp.float32)      # (H, T)
        for k in range(1, in_features):
            acc = acc + w1[:, k:k + 1] * x_ref[k:k + 1, :].astype(jnp.float32)
    else:
        acc = jnp.dot(w1_ref[...].astype(jnp.float32),
                      x_ref[...].astype(jnp.float32),
                      preferred_element_type=jnp.float32)
    h = jnp.tanh(acc + b1_ref[...])                               # (H, T)

    # ---- layer2 + tanh : (H, H) @ (H, T) + (H, 1) ---------------------------
    mxu_dt = w2_ref.dtype   # f32, or bf16 when use_bf16=True (f32 accumulation)
    h = jnp.dot(w2_ref[...], h.astype(mxu_dt),
                preferred_element_type=jnp.float32) + b2_ref[...]
    h = jnp.tanh(h)

    # ---- layer3 + tanh -------------------------------------------------------
    h = jnp.dot(w3_ref[...], h.astype(mxu_dt),
                preferred_element_type=jnp.float32) + b3_ref[...]
    h = jnp.tanh(h)

    # ---- layer4 (no bias) : (out, H) @ (H, T) --------------------------------
    o_ref[...] = jnp.dot(w4_ref[...], h.astype(mxu_dt),
                         preferred_element_type=jnp.float32).astype(o_ref.dtype)


def network_forward(x, params, *, tile_n=16384, use_bf16=False):
    """x: (N, input_size) float32; params: PyTorch-layout weights/biases.

    tile_n: batch columns per grid step (sweepable; 8K-32K recommended).
    use_bf16: stream x / store w2-w4 in bf16 (f32 accumulation) - worthwhile on
              v6e/v7x if the PINN tolerance allows; keep False on v5e.
    """
    n, input_size = x.shape
    hidden = params["w1"].shape[0]
    out_features = params["w4"].shape[0]

    stream_dtype = jnp.bfloat16 if use_bf16 else jnp.float32

    # Lane-dense transposed layout (batch on the 128-wide lane axis).  No
    # explicit batch padding: Pallas handles the ragged last tile itself.
    x_t = x.T.astype(stream_dtype)                                 # (in, N)

    # Tile selection: big tiles to amortize per-step overhead, but keep >= 2
    # grid steps when possible (v7x megacore) and never below one 128-lane vreg.
    tile_cap = max(128, _round_up(pl.cdiv(n, 2), 128))
    tile_n = max(128, min(_round_up(tile_n, 128), tile_cap))
    grid_n = pl.cdiv(n, tile_n)

    # Weights: layer1 stays f32 (tiny, VPU path); layers 2-4 follow stream dtype.
    w1 = params["w1"].astype(jnp.float32)
    b1 = params["b1"].astype(jnp.float32)
    w2 = params["w2"].astype(stream_dtype)
    b2 = params["b2"].astype(jnp.float32)
    w3 = params["w3"].astype(stream_dtype)
    b3 = params["b3"].astype(jnp.float32)
    w4 = params["w4"].astype(stream_dtype)

    # Advisory cost estimate for the XLA scheduler.
    flops = int(2 * n * (input_size * hidden
                         + 2 * hidden * hidden
                         + hidden * out_features))
    transcendentals = int(3 * n * hidden)
    param_bytes = int(sum(int(p.size) for p in params.values()) * 4)
    bytes_accessed = int(n * input_size * jnp.dtype(stream_dtype).itemsize
                         + n * out_features * 4 + param_bytes)

    # Scoped VMEM: enough for the double-buffered I/O tiles + f32 activation
    # temporaries, clamped to <= 48 MiB (headroom under v7x's 64 MiB physical),
    # and >= 32 MiB (above v5e's 16 MiB scoped default).
    per_col_bytes = (2 * input_size * jnp.dtype(stream_dtype).itemsize
                     + 2 * out_features * 4
                     + 6 * hidden * 4)
    vmem_need = tile_n * per_col_bytes + 4 * param_bytes + (4 << 20)
    vmem_limit = int(min(max(vmem_need, 32 << 20), 48 << 20))

    out_t = pl.pallas_call(
        _mlp_kernel,
        out_shape=jax.ShapeDtypeStruct((out_features, n), jnp.float32),
        grid=(grid_n,),
        in_specs=[
            # streamed input tile: batch on the lane axis (ragged tail handled
            # by Pallas; each batch column is independent so garbage columns in
            # the last tile cannot poison in-bounds results).
            pl.BlockSpec((input_size, tile_n), lambda i: (0, i)),
            # weights/biases: full blocks, constant index_map -> VMEM-resident.
            pl.BlockSpec(w1.shape, lambda i: (0, 0)),
            pl.BlockSpec(b1.shape, lambda i: (0, 0)),
            pl.BlockSpec(w2.shape, lambda i: (0, 0)),
            pl.BlockSpec(b2.shape, lambda i: (0, 0)),
            pl.BlockSpec(w3.shape, lambda i: (0, 0)),
            pl.BlockSpec(b3.shape, lambda i: (0, 0)),
            pl.BlockSpec(w4.shape, lambda i: (0, 0)),
        ],
        out_specs=pl.BlockSpec((out_features, tile_n), lambda i: (0, i)),
        compiler_params=pltpu.CompilerParams(
            dimension_semantics=("parallel",),
            vmem_limit_bytes=vmem_limit),
        cost_estimate=pl.CostEstimate(
            flops=flops,
            transcendentals=transcendentals,
            bytes_accessed=bytes_accessed),
    )(x_t, w1, b1, w2, b2, w3, b3, w4)

    # back to (N, out_features)
    return out_t.T


def init_params(key, input_size, hidden_size, output_size):
    """PyTorch nn.Linear-style init, weights in (out_features, in_features) layout."""
    ks = jax.random.split(key, 7)

    def uni(k, shape, fan_in):
        bound = 1.0 / jnp.sqrt(jnp.float32(fan_in))
        return jax.random.uniform(k, shape, jnp.float32, -bound, bound)

    return {
        "w1": uni(ks[0], (hidden_size, input_size), input_size),
        "b1": uni(ks[1], (hidden_size, 1), input_size),
        "w2": uni(ks[2], (hidden_size, hidden_size), hidden_size),
        "b2": uni(ks[3], (hidden_size, 1), hidden_size),
        "w3": uni(ks[4], (hidden_size, hidden_size), hidden_size),
        "b3": uni(ks[5], (hidden_size, 1), hidden_size),
        "w4": uni(ks[6], (output_size, hidden_size), hidden_size),  # layer4: bias=False
    }


def network_forward_ref(x, p):
    """Pure-JAX reference (row-major, matches PyTorch semantics)."""
    h = jnp.tanh(x @ p["w1"].T + p["b1"].T)
    h = jnp.tanh(h @ p["w2"].T + p["b2"].T)
    h = jnp.tanh(h @ p["w3"].T + p["b3"].T)
    return h @ p["w4"].T


if __name__ == "__main__":
    # PINN-style sizes: 2-D collocation points -> scalar field value.
    input_size, hidden_size, output_size = 2, 32, 1

    key = jax.random.PRNGKey(0)
    kx, kx2, kp = jax.random.split(key, 3)
    params = init_params(kp, input_size, hidden_size, output_size)

    # 1) small batch (single 128-wide tile, ragged read/write)
    batch = 8
    x = jax.random.uniform(kx, (batch, input_size), jnp.float32, -1.0, 1.0)
    out = jax.block_until_ready(network_forward(x, params))
    ref = network_forward_ref(x, params)
    assert out.shape == (batch, output_size)
    assert jnp.allclose(out, ref, atol=1e-5, rtol=1e-5), "mismatch (small batch)"

    # 2) larger batch, default tiling (>= 2 grid steps, no explicit padding)
    batch2 = 1030
    x2 = jax.random.uniform(kx2, (batch2, input_size), jnp.float32, -1.0, 1.0)
    out2 = jax.block_until_ready(network_forward(x2, params))
    ref2 = network_forward_ref(x2, params)
    assert out2.shape == (batch2, output_size)
    assert jnp.allclose(out2, ref2, atol=1e-5, rtol=1e-5), "mismatch (default tiling)"

    # 3) forced small tile: multiple grid steps + ragged last tile
    out3 = jax.block_until_ready(network_forward(x2, params, tile_n=512))
    assert jnp.allclose(out3, ref2, atol=1e-5, rtol=1e-5), "mismatch (ragged multi-tile)"

    # 4) optional bf16 operand path (f32 accumulation) - looser tolerance
    out4 = jax.block_until_ready(network_forward(x2, params, use_bf16=True))
    assert jnp.allclose(out4, ref2, atol=5e-2, rtol=5e-2), "mismatch (bf16 path)"

    print("KERNEL_OK")
</pallas_src>

<mosaic_0001>
module attributes {stable_mosaic.version = 11 : i64} {
  func.func @_mlp_kernel(%arg0: i32, %arg1: memref<2x128xf32, #tpu.memory_space<vmem>>, %arg2: memref<32x2xf32, #tpu.memory_space<vmem>>, %arg3: memref<32x1xf32, #tpu.memory_space<vmem>>, %arg4: memref<32x32xf32, #tpu.memory_space<vmem>>, %arg5: memref<32x1xf32, #tpu.memory_space<vmem>>, %arg6: memref<32x32xf32, #tpu.memory_space<vmem>>, %arg7: memref<32x1xf32, #tpu.memory_space<vmem>>, %arg8: memref<1x32xf32, #tpu.memory_space<vmem>>, %arg9: memref<1x128xf32, #tpu.memory_space<vmem>>) attributes {dimension_semantics = [#tpu.dimension_semantics<parallel>], iteration_bounds = array<i64: 1>, scalar_prefetch = 0 : i64, scratch_operands = 0 : i64, tpu.core_type = #tpu.core_type<tc>, window_params = [{transform_indices = @transform_0, window_bounds = array<i64: 2, 128>}, {pipeline_mode = #tpu.pipeline_mode<synchronous>, transform_indices = @transform_1, window_bounds = array<i64: 32, 2>}, {pipeline_mode = #tpu.pipeline_mode<synchronous>, transform_indices = @transform_2, window_bounds = array<i64: 32, 1>}, {pipeline_mode = #tpu.pipeline_mode<synchronous>, transform_indices = @transform_3, window_bounds = array<i64: 32, 32>}, {pipeline_mode = #tpu.pipeline_mode<synchronous>, transform_indices = @transform_4, window_bounds = array<i64: 32, 1>}, {pipeline_mode = #tpu.pipeline_mode<synchronous>, transform_indices = @transform_5, window_bounds = array<i64: 32, 32>}, {pipeline_mode = #tpu.pipeline_mode<synchronous>, transform_indices = @transform_6, window_bounds = array<i64: 32, 1>}, {pipeline_mode = #tpu.pipeline_mode<synchronous>, transform_indices = @transform_7, window_bounds = array<i64: 1, 32>}, {transform_indices = @transform_8, window_bounds = array<i64: 1, 128>}]} {
    %c0 = arith.constant 0 : index
    %c0_0 = arith.constant 0 : index
    %0 = vector.load %arg2[%c0, %c0_0] : memref<32x2xf32, #tpu.memory_space<vmem>>, vector<32x2xf32>
    %1 = vector.extract_strided_slice %0 {offsets = [0, 0], sizes = [32, 1], strides = [1, 1]} : vector<32x2xf32> to vector<32x1xf32>
    %c0_1 = arith.constant 0 : index
    %c0_2 = arith.constant 0 : index
    %2 = vector.load %arg1[%c0_1, %c0_2] : memref<2x128xf32, #tpu.memory_space<vmem>>, vector<1x128xf32>
    %3 = vector.broadcast %1 : vector<32x1xf32> to vector<32x128xf32>
    %4 = vector.broadcast %2 : vector<1x128xf32> to vector<32x128xf32>
    %5 = arith.mulf %3, %4 : vector<32x128xf32>
    %6 = vector.extract_strided_slice %0 {offsets = [0, 1], sizes = [32, 1], strides = [1, 1]} : vector<32x2xf32> to vector<32x1xf32>
    %c1 = arith.constant 1 : index
    %c0_3 = arith.constant 0 : index
    %7 = vector.load %arg1[%c1, %c0_3] : memref<2x128xf32, #tpu.memory_space<vmem>>, vector<1x128xf32>
    %8 = vector.broadcast %6 : vector<32x1xf32> to vector<32x128xf32>
    %9 = vector.broadcast %7 : vector<1x128xf32> to vector<32x128xf32>
    %10 = arith.mulf %8, %9 : vector<32x128xf32>
    %11 = arith.addf %5, %10 : vector<32x128xf32>
    %c0_4 = arith.constant 0 : index
    %c0_5 = arith.constant 0 : index
    %12 = vector.load %arg3[%c0_4, %c0_5] : memref<32x1xf32, #tpu.memory_space<vmem>>, vector<32x1xf32>
    %13 = vector.broadcast %12 : vector<32x1xf32> to vector<32x128xf32>
    %14 = arith.addf %11, %13 : vector<32x128xf32>
    %15 = math.tanh %14 : vector<32x128xf32>
    %c0_6 = arith.constant 0 : index
    %c0_7 = arith.constant 0 : index
    %16 = vector.load %arg4[%c0_6, %c0_7] : memref<32x32xf32, #tpu.memory_space<vmem>>, vector<32x32xf32>
    %cst = arith.constant dense<0.000000e+00> : vector<32x128xf32>
    %17 = tpu.matmul %16, %15, %cst {dimension_numbers = #tpu.dot_dimension_numbers<[1], [0], [0], [1], [0, 0, 1, 1], [], []>} : vector<32x32xf32>, vector<32x128xf32>, vector<32x128xf32> -> vector<32x128xf32>
    %c0_8 = arith.constant 0 : index
    %c0_9 = arith.constant 0 : index
    %18 = vector.load %arg5[%c0_8, %c0_9] : memref<32x1xf32, #tpu.memory_space<vmem>>, vector<32x1xf32>
    %19 = vector.broadcast %18 : vector<32x1xf32> to vector<32x128xf32>
    %20 = arith.addf %17, %19 : vector<32x128xf32>
    %21 = math.tanh %20 : vector<32x128xf32>
    %c0_10 = arith.constant 0 : index
    %c0_11 = arith.constant 0 : index
    %22 = vector.load %arg6[%c0_10, %c0_11] : memref<32x32xf32, #tpu.memory_space<vmem>>, vector<32x32xf32>
    %cst_12 = arith.constant dense<0.000000e+00> : vector<32x128xf32>
    %23 = tpu.matmul %22, %21, %cst_12 {dimension_numbers = #tpu.dot_dimension_numbers<[1], [0], [0], [1], [0, 0, 1, 1], [], []>} : vector<32x32xf32>, vector<32x128xf32>, vector<32x128xf32> -> vector<32x128xf32>
    %c0_13 = arith.constant 0 : index
    %c0_14 = arith.constant 0 : index
    %24 = vector.load %arg7[%c0_13, %c0_14] : memref<32x1xf32, #tpu.memory_space<vmem>>, vector<32x1xf32>
    %25 = vector.broadcast %24 : vector<32x1xf32> to vector<32x128xf32>
    %26 = arith.addf %23, %25 : vector<32x128xf32>
    %27 = math.tanh %26 : vector<32x128xf32>
    %c0_15 = arith.constant 0 : index
    %c0_16 = arith.constant 0 : index
    %28 = vector.load %arg8[%c0_15, %c0_16] : memref<1x32xf32, #tpu.memory_space<vmem>>, vector<1x32xf32>
    %cst_17 = arith.constant dense<0.000000e+00> : vector<1x128xf32>
    %29 = tpu.matmul %28, %27, %cst_17 {dimension_numbers = #tpu.dot_dimension_numbers<[1], [0], [0], [1], [0, 0, 1, 1], [], []>} : vector<1x32xf32>, vector<32x128xf32>, vector<1x128xf32> -> vector<1x128xf32>
    %c0_18 = arith.constant 0 : index
    %c0_19 = arith.constant 0 : index
    %30 = vector.load %arg9[%c0_18, %c0_19] : memref<1x128xf32, #tpu.memory_space<vmem>>, vector<1x128xf32>
    tpu.vector_store %arg9[%c0_18, %c0_19], %29 {strides = array<i32>} : memref<1x128xf32, #tpu.memory_space<vmem>>, vector<1x128xf32>,
    return
  }
  func.func @transform_0(%arg0: i32) -> (i32, i32) {
    %c0_i32 = arith.constant 0 : i32
    %c0_i32_0 = arith.constant 0 : i32
    return %c0_i32, %arg0 : i32, i32
  }
  func.func @transform_1(%arg0: i32) -> (i32, i32) {
    %c0_i32 = arith.constant 0 : i32
    %c0_i32_0 = arith.constant 0 : i32
    %c0_i32_1 = arith.constant 0 : i32
    return %c0_i32, %c0_i32_0 : i32, i32
  }
  func.func @transform_2(%arg0: i32) -> (i32, i32) {
    %c0_i32 = arith.constant 0 : i32
    %c0_i32_0 = arith.constant 0 : i32
    %c0_i32_1 = arith.constant 0 : i32
    return %c0_i32, %c0_i32_0 : i32, i32
  }
  func.func @transform_3(%arg0: i32) -> (i32, i32) {
    %c0_i32 = arith.constant 0 : i32
    %c0_i32_0 = arith.constant 0 : i32
    %c0_i32_1 = arith.constant 0 : i32
    return %c0_i32, %c0_i32_0 : i32, i32
  }
  func.func @transform_4(%arg0: i32) -> (i32, i32) {
    %c0_i32 = arith.constant 0 : i32
    %c0_i32_0 = arith.constant 0 : i32
    %c0_i32_1 = arith.constant 0 : i32
    return %c0_i32, %c0_i32_0 : i32, i32
  }
  func.func @transform_5(%arg0: i32) -> (i32, i32) {
    %c0_i32 = arith.constant 0 : i32
    %c0_i32_0 = arith.constant 0 : i32
    %c0_i32_1 = arith.constant 0 : i32
    return %c0_i32, %c0_i32_0 : i32, i32
  }
  func.func @transform_6(%arg0: i32) -> (i32, i32) {
    %c0_i32 = arith.constant 0 : i32
    %c0_i32_0 = arith.constant 0 : i32
    %c0_i32_1 = arith.constant 0 : i32
    return %c0_i32, %c0_i32_0 : i32, i32
  }
  func.func @transform_7(%arg0: i32) -> (i32, i32) {
    %c0_i32 = arith.constant 0 : i32
    %c0_i32_0 = arith.constant 0 : i32
    %c0_i32_1 = arith.constant 0 : i32
    return %c0_i32, %c0_i32_0 : i32, i32
  }
  func.func @transform_8(%arg0: i32) -> (i32, i32) {
    %c0_i32 = arith.constant 0 : i32
    %c0_i32_0 = arith.constant 0 : i32
    return %c0_i32, %arg0 : i32, i32
  }
}

</mosaic_0001>

<bundles_post_ra>
// kernel: tpu_custom_call.1
= control target key start
LH: loop header
LB: loop body
LE: loop exit
PB: predicated region body
PF: predicated region fallthrough
CT: control target
= control target key end

     0   :  { %v625_v2 = vmov 1   ;;  %s778_s0 = inlined_call_operand.vmem [shape: f32[2,8], index: 0, kind: input, shape index: {}]   ;;  %s779_s1 = inlined_call_operand.vmem [shape: f32[32,2], index: 1, kind: input, shape index: {}]   ;;  %s780_s2 = inlined_call_operand.vmem [shape: f32[32,1], index: 2, kind: input, shape index: {}]   ;;  %s781_s3 = inlined_call_operand.vmem [shape: f32[32,32], index: 3, kind: input, shape index: {}]   ;;  %s782_s4 = inlined_call_operand.vmem [shape: f32[32,1], index: 4, kind: input, shape index: {}]   ;;  %s783_s5 = inlined_call_operand.vmem [shape: f32[32,32], index: 5, kind: input, shape index: {}]   ;;  %s784_s6 = inlined_call_operand.vmem [shape: f32[32,1], index: 6, kind: input, shape index: {}]   ;;  %s785_s7 = inlined_call_operand.vmem [shape: f32[1,32], index: 7, kind: input, shape index: {}]   ;;  %s786_s8 = inlined_call_operand.hbm [shape: f32[1,8], index: 8, kind: output, shape index: {}]  }
   0x1   :  { %v32_v0 = vld [vmem:[%s779_s1 + $0x10] sm:$0xff]  ;;  %v30_v1 = vld [vmem:[%s779_s1] sm:$0xff]  ;;  %573 = vset.pattern.permute.xlu0 %v625_v2  ;;  %571 = vset.pattern.permute.xlu1 %v625_v2  ;;  %v31_v3 = vld [vmem:[%s779_s1 + $0x8] sm:$0xff] }
   0x2   :  { %73 = vperm.xlu0 %573, %v32_v0   ;;  %65 = vperm.xlu1 %571, %v30_v1  }
   0x3   :  { %13 = vsyncpa [#allocation3], 0  ;;  %v626_v4 = vmov 0   ;;  %v33_v5 = vld [vmem:[%s779_s1 + $0x18] sm:$0xff]  ;;  %v93_v6 = vld [vmem:[%s780_s2 + $0x8] sm:$0xff]  ;;  %vm152_vm0 = vcmask 261120  }
   0x4   :  { %v92_v7 = vld [vmem:[%s780_s2] sm:$0xff]  ;;  %v94_v9 = vld [vmem:[%s780_s2 + $0x10] sm:$0xff]  ;;  %v95_v11 = vld [vmem:[%s780_s2 + $0x18] sm:$0xff]  ;;  %vm628_vm1 = vmmov 0   ;;  %s630_s29 = smov [#allocation2]  }
   0x5   :  { %v128_v8 = vld [vmem:[%s782_s4] sm:$0xff]  ;;  %v130_v10 = vld [vmem:[%s782_s4 + $0x10] sm:$0xff]  ;;  %v129_v13 = vld [vmem:[%s782_s4 + $0x8] sm:$0xff]  ;;  %s464_s30 = sshll.u32 %s630_s29, 4  ;;  %s465_s30 = int_to_ptr.vmem [resolvable:$true] %s464_s30 }
   0x6   :  { %574 = vset.pattern.permute.xlu0 %v626_v4  ;;  %69 = vperm.xlu1 %571, %v31_v3   ;;  %v258_v12 = vld [vmem:[%s784_s6] sm:$0xff]  ;;  %v260_v14 = vld [vmem:[%s784_s6 + $0x10] sm:$0xff]  ;;  %v131_v15 = vld [vmem:[%s782_s4 + $0x18] sm:$0xff]  ;;  %s601_s9 = scalar_lea.vmem %s465_s30, 16  ;;  %s605_s2 = scalar_lea.vmem %s465_s30, 32 }
   0x7   :  { %37 = vperm.xlu0 %574, %v30_v1   ;;  %v259_v16 = vld [vmem:[%s784_s6 + $0x8] sm:$0xff]  ;;  %v261_v17 = vld [vmem:[%s784_s6 + $0x18] sm:$0xff]  ;;  %v124_v18 = vld [vmem:[%s781_s3] sm:$0xff]  ;;  %p602_p0 = scmp.ne.s32.totalorder %s465_s30, %s601_s9  ;;  %p606_p1 = scmp.lt.s32.totalorder %s465_s30, %s465_s30 }
   0x8   :  { %512 = vmatprep.mubr.msk.f32.mxu0 %vm152_vm0, %v124_v18  ;;  %v472_v25 = vld [vmem:[%s778_s0] ss:$0 sm:$0xff]  ;;  %v473_v27 = vld [vmem:[%s778_s0 + $0x1] ss:$0 sm:$0xff]  ;;  %v125_v55 = vld [vmem:[%s781_s3 + $0x8] sm:$0xff]  ;;  %p607_p2 = scmp.lt.s32.totalorder %s605_s2, %s601_s9 }
   0x9   :  { %v126_v56 = vld [vmem:[%s781_s3 + $0x10] sm:$0xff]  ;;  %v127_v57 = vld [vmem:[%s781_s3 + $0x18] sm:$0xff]  ;;  %v254_v58 = vld [vmem:[%s783_s5] sm:$0xff] }
   0xa   :  { %572 = vset.pattern.permute.xlu1 %v626_v4  ;;  %526 = vmatprep.mubr.msk.f32.mxu1 %vm152_vm0, %v254_v58  ;;  %p608_p3 = por %p607_p2, %p606_p1 }
   0xb   :  { %42 = vperm.xlu0 %574, %v31_v3   ;;  %52 = vperm.xlu1 %572, %v33_v5  }
   0xc   :  { %p609_p4 = pnand %p608_p3, %p602_p0 }
   0xf   :  { %47 = vperm.xlu0 %574, %v32_v0   ;;  %575 = vset.pattern.permute.xlu1 %v625_v2 }
  0x10   :  { %77 = vperm.xlu1 %575, %v33_v5  }
  0x13   :  { %103 = vperm.xlu0 %574, %v93_v6  }
  0x14   :  { %576 = vset.pattern.permute.xlu1 %v626_v4 }
  0x15   :  { %98 = vperm.xlu1 %576, %v92_v7  }
  0x17   :  { %134 = vperm.xlu0 %574, %v128_v8  }
  0x19   :  { %108 = vperm.xlu1 %576, %v94_v9  }
  0x1b   :  { %144 = vperm.xlu0 %574, %v130_v10  }
  0x1d   :  { %113 = vperm.xlu1 %576, %v95_v11  }
  0x1f   :  { %264 = vperm.xlu0 %574, %v258_v12  }
  0x21   :  { %139 = vperm.xlu1 %576, %v129_v13   ;;  %v255_v13 = vld [vmem:[%s783_s5 + $0x8] sm:$0xff] }
  0x23   :  { %274 = vperm.xlu0 %574, %v260_v14   ;;  %v256_v14 = vld [vmem:[%s783_s5 + $0x10] sm:$0xff] }
  0x25   :  { %149 = vperm.xlu1 %576, %v131_v15   ;;  %v257_v15 = vld [vmem:[%s783_s5 + $0x18] sm:$0xff] }
  0x29   :  { %269 = vperm.xlu1 %576, %v259_v16   ;;  %v627_v16 = vmov 0.0|0.0  }
  0x2d   :  { %279 = vperm.xlu1 %576, %v261_v17   ;;  %v629_v17 = vmov 0.0  }
  0x81   :  { %v66_v19 = vpop.permute.xlu1 %65  ;;  %v74_v20 = vpop.permute.xlu0 %73 }
  0x82   :  { %v84_v32 = vmul.f32 %v473_v27, %v66_v19  ;;  %v86_v40 = vmul.f32 %v473_v27, %v74_v20 }
  0x85   :  { %v70_v21 = vpop.permute.xlu1 %69 }
  0x86   :  { %v38_v22 = vpop.permute.xlu0 %37  ;;  %v85_v29 = vmul.f32 %v473_v27, %v70_v21 }
  0x87   :  { %v59_v30 = vmul.f32 %v472_v25, %v38_v22 }
  0x89   :  { %v88_v36 = vadd.f32 %v84_v32, %v59_v30 }
  0x8a   :  { %v43_v23 = vpop.permute.xlu0 %42  ;;  %v53_v24 = vpop.permute.xlu1 %52 }
  0x8b   :  { %v60_v26 = vmul.f32 %v472_v25, %v43_v23  ;;  %v62_v44 = vmul.f32 %v472_v25, %v53_v24 }
  0x8d   :  { %v89_v33 = vadd.f32 %v85_v29, %v60_v26 }
  0x8e   :  { %v48_v28 = vpop.permute.xlu0 %47 }
  0x8f   :  { %v78_v31 = vpop.permute.xlu1 %77  ;;  %v61_v37 = vmul.f32 %v472_v25, %v48_v28 }
  0x90   :  { %v87_v41 = vmul.f32 %v473_v27, %v78_v31 }
  0x91   :  { %v90_v42 = vadd.f32 %v86_v40, %v61_v37 }
  0x92   :  { %v104_v34 = vpop.permute.xlu0 %103  ;;  %v91_v46 = vadd.f32 %v87_v41, %v62_v44 }
  0x93   :  { %v117_v35 = vadd.f32 %v104_v34, %v89_v33 }
  0x94   :  { %v99_v38 = vpop.permute.xlu1 %98 }
  0x95   :  { %v116_v39 = vadd.f32 %v99_v38, %v88_v36  ;;  %577 = vtanh.f32 %v117_v35  ;;  %v383_v36 = vld [vmem:[%s785_s7] sm:$0x1] }
  0x96   :  { %v135_v60 = vpop.permute.xlu0 %134 }
  0x97   :  { %579 = vtanh.f32 %v116_v39 }
  0x98   :  { %v109_v43 = vpop.permute.xlu1 %108 }
  0x99   :  { %v118_v45 = vadd.f32 %v109_v43, %v90_v42 }
  0x9a   :  { %v145_v3 = vpop.permute.xlu0 %144 }
  0x9b   :  { %581 = vtanh.f32 %v118_v45 }
  0x9c   :  { %v114_v47 = vpop.permute.xlu1 %113 }
  0x9d   :  { %v119_v48 = vadd.f32 %v114_v47, %v91_v46 }
  0x9e   :  { %v265_v19 = vpop.permute.xlu0 %264 }
  0x9f   :  { %583 = vtanh.f32 %v119_v48  ;;  %v578_v49 = vpop.eup %577 }
  0xa0   :  { %v140_v59 = vpop.permute.xlu1 %139 }
  0xa1   :  { %v580_v50 = vpop.eup %579 }
  0xa2   :  { %v543_v51 = vpack.c.bf16 %v578_v49, %v580_v50  ;;  %v275_v26 = vpop.permute.xlu0 %274 }
  0xa4   :  { %544 = vmatprep.subr.bf16.mxu0 %v543_v51  ;;  %v150_v1 = vpop.permute.xlu1 %149 }
  0xa5   :  { %546 = vmatpush3.bf16.msra.mxu0 %v543_v51  ;;  %v582_v52 = vpop.eup %581 }
  0xa8   :  { %v270_v18 = vpop.permute.xlu1 %269 }
  0xa9   :  { %v584_v53 = vpop.eup %583 }
  0xaa   :  { %v547_v54 = vpack.c.bf16 %v584_v53, %v582_v52 }
  0xac   :  { %548 = vmatprep.subr.bf16.mxu0 %v547_v54  ;;  %v280_v24 = vpop.permute.xlu1 %279 }
  0xad   :  { %550 = vmatpush3.bf16.msra.mxu0 %v547_v54 }
  0xae   :  { %559 = vmatprep.subr.bf16.mxu0 %v627_v16 }
  0xb0   :  { %513 = vmatmul.mubr.msk.f32.vlgmr.msra.gmra.mrb[0].mxu0 %vm152_vm0, %v125_v55 }
  0xb1   :  { %515 = vmatprep.mubr.msk.f32.mxu0 %vm152_vm0, %v126_v56 }
  0xb4   :  { %516 = vmatmul.mubr.msk.f32.gmra.mrb[2].mxu0 %vm152_vm0, %v127_v57 }
  0xb5   :  { %540 = vmatprep.mubr.msk.f32.mxu0 %vm628_vm1, %v629_v17 }
 0x183   :  { %v514_v61 = vpop.f32.mrb[0].mxu0 }
 0x184   :  { %v237_v62 = vadd.f32 %v514_v61, %v140_v59  ;;  %v231_v63 = vpop.f32.mrb[1].mxu0 }
 0x185   :  { %v232_v0 = vadd.f32 %v231_v63, %v135_v60 }
 0x186   :  { %585 = vtanh.f32 %v237_v62 }
 0x187   :  { %587 = vtanh.f32 %v232_v0  ;;  %v517_v2 = vpop.f32.mrb[2].mxu0 }
 0x188   :  { %v247_v4 = vadd.f32 %v517_v2, %v150_v1  ;;  %v241_v5 = vpop.f32.mrb[3].mxu0 }
 0x189   :  { %v242_v6 = vadd.f32 %v241_v5, %v145_v3 }
 0x18a   :  { %589 = vtanh.f32 %v247_v4 }
 0x18b   :  { %591 = vtanh.f32 %v242_v6 }
 0x190   :  { %v586_v7 = vpop.eup %585 }
 0x191   :  { %v588_v8 = vpop.eup %587 }
 0x192   :  { %v551_v9 = vpack.c.bf16 %v586_v7, %v588_v8 }
 0x194   :  { %v590_v10 = vpop.eup %589  ;;  %552 = vmatprep.subr.bf16.mxu1 %v551_v9 }
 0x195   :  { %v592_v11 = vpop.eup %591  ;;  %554 = vmatpush3.bf16.msra.mxu1 %v551_v9 }
 0x196   :  { %v555_v12 = vpack.c.bf16 %v590_v10, %v592_v11 }
 0x198   :  { %556 = vmatprep.subr.bf16.mxu1 %v555_v12 }
 0x199   :  { %558 = vmatpush3.bf16.msra.mxu1 %v555_v12 }
 0x19c   :  { %527 = vmatmul.mubr.msk.f32.vlgmr.msra.gmra.mrb[0].mxu1 %vm152_vm0, %v255_v13 }
 0x19d   :  { %529 = vmatprep.mubr.msk.f32.mxu1 %vm152_vm0, %v256_v14 }
 0x1a0   :  { %530 = vmatmul.mubr.msk.f32.gmra.mrb[2].mxu1 %vm152_vm0, %v257_v15 }
 0x26f   :  { %v528_v20 = vpop.f32.mrb[0].mxu1 }
 0x270   :  { %v366_v21 = vadd.f32 %v528_v20, %v270_v18  ;;  %v360_v22 = vpop.f32.mrb[1].mxu1 }
 0x271   :  { %v361_v23 = vadd.f32 %v360_v22, %v265_v19 }
 0x272   :  { %593 = vtanh.f32 %v366_v21 }
 0x273   :  { %595 = vtanh.f32 %v361_v23  ;;  %v531_v25 = vpop.f32.mrb[2].mxu1 }
 0x274   :  { %v376_v27 = vadd.f32 %v531_v25, %v280_v24  ;;  %v370_v28 = vpop.f32.mrb[3].mxu1 }
 0x275   :  { %v371_v29 = vadd.f32 %v370_v28, %v275_v26 }
 0x276   :  { %597 = vtanh.f32 %v376_v27 }
 0x277   :  { %599 = vtanh.f32 %v371_v29 }
 0x27c   :  { %v594_v30 = vpop.eup %593 }
 0x27d   :  { %v596_v31 = vpop.eup %595 }
 0x27e   :  { %v560_v32 = vpack.c.bf16 %v594_v30, %v596_v31 }
 0x280   :  { %v598_v33 = vpop.eup %597  ;;  %561 = vmatpush3.bf16.msra.mxu0 %v560_v32 }
 0x281   :  { %v600_v34 = vpop.eup %599  ;;  %562 = vmatprep.subr.bf16.mxu0 %v627_v16 }
 0x282   :  { %v563_v35 = vpack.c.bf16 %v598_v33, %v600_v34 }
 0x284   :  { %564 = vmatpush3.bf16.msra.mxu0 %v563_v35 }
 0x287   :  { %541 = vmatmul.mubr.msk.f32.vlgmr.msra.gmra.mrb[4].mxu0 %vm152_vm0, %v383_v36 }
 0x35a   :  { %v453_v37 = vpop.f32.mrb[4].mxu0 }
 0x35b   :  { %457 = vst [vmem:[#allocation2] sm:$0x1] %v453_v37  ;;  %v542_v38 = vpop.f32.mrb[5].mxu0 }
 0x35c   :  { %612 = shalt.err (!%p609_p4)
}
 0x35d   :  { %s613_s7 = scalar_lea.hbm %s786_s8, 16 }
 0x35e   :  { %p614_p5 = scmp.ne.s32.totalorder %s786_s8, %s613_s7  ;;  %p617_p6 = scmp.lt.u32.totalorder %s613_s7, %s786_s8 }
 0x360   :  { %p619_p7 = pnand %p617_p6, %p614_p5 }
 0x362   :  { %622 = shalt.err (!%p619_p7)
}
 0x363   :  { %467 = dma.vmem_to_hbm [thread:$0]  %s465_s30, 16, %s786_s8, [#allocation3]  }
 0x364   :  { %623 = dma.done.wait [#allocation3], 16  }
 0x365   :  { %624 = vsyncadd [#allocation3], 4294967280 }
 0x366   :  { %471 = vsyncpa [#allocation3], 1 }

</bundles_post_ra>
